<compile_context>
chip_gen: v7x
topology: tpu7x:2x2x1
jax: 0.10.0
libtpu: 0.0.40
codegen_flags: <defaults>
</compile_context>

<pallas_src>
import functools

import jax
import jax.numpy as jnp
from jax import lax
from jax.experimental import pallas as pl
from jax.experimental.pallas import tpu as pltpu


def _sepconv_kernel(x_ref, wdw_ref, b_ref, o_ref, *, H_out, KH, KW, W_out, Cin):
    """Compute one batch element's full output in a single grid step.

    x_ref  : (1, Hp, Wp*Cin)            zero-padded image, channel-fastest flat, f32
    wdw_ref: (KH*KW, H_out, W_out*Cin)  per-tap depthwise weights, pre-broadcast, f32
    b_ref  : (W_out*Cin, W_out*Cout)    block-diagonal pointwise weight matrix, f32
    o_ref  : (1, H_out, W_out*Cout)     lane-dense output slab
    """
    x = x_ref[0]                                  # (Hp, Wp*Cin)
    wc = W_out * Cin

    acc = jnp.zeros((H_out, wc), jnp.float32)
    # Depthwise conv: KH*KW shifted windows * pre-broadcast weight slabs.
    # Pure VPU FMAs (kw shift is a small lane rotate, kh shift a sublane offset);
    # no broadcasts are materialized inside the unrolled tap loop.
    for kh in range(KH):
        for kw in range(KW):
            win = x[kh:kh + H_out, kw * Cin:kw * Cin + wc]   # (H_out, W_out*Cin)
            acc = acc + win * wdw_ref[kh * KW + kw]

    # Pointwise 1x1 conv: single lane-dense matmul straight into output layout.
    out = jnp.dot(acc, b_ref[...], preferred_element_type=jnp.float32)
    o_ref[0] = out.astype(o_ref.dtype)


def separable_conv2d(x_nchw, w_depthwise, w_pointwise, *, stride=1, padding=1,
                     dilation=1):
    """Forward pass matching the PyTorch SeparableConv2d module (bias=False).

    x_nchw      : (N, Cin, H, W)
    w_depthwise : (Cin, 1, KH, KW)   -- torch layout for groups=Cin conv
    w_pointwise : (Cout, Cin, 1, 1)  -- torch layout for 1x1 conv
    returns     : (N, Cout, H_out, W_out)
    """
    assert stride == 1 and dilation == 1, (
        "TODO(synk): stride>1 / dilation>1 not implemented")

    N, Cin, H, W = x_nchw.shape
    KH, KW = int(w_depthwise.shape[2]), int(w_depthwise.shape[3])
    Cout = int(w_pointwise.shape[0])
    H_out = H + 2 * padding - KH + 1
    W_out = W + 2 * padding - KW + 1

    # ---- layout plumbing (plain JAX, outside the kernel) -------------------
    # NCHW -> NHWC -> zero-pad -> (N, Hp, Wp*Cin) channel-fastest flat layout.
    x_nhwc = jnp.transpose(x_nchw, (0, 2, 3, 1)).astype(jnp.float32)
    x_pad = jnp.pad(x_nhwc, ((0, 0), (padding, padding), (padding, padding), (0, 0)))
    Hp, Wp = x_pad.shape[1], x_pad.shape[2]
    x_flat = x_pad.reshape(N, Hp, Wp * Cin)

    # Depthwise weights: one slab per tap, tiled across W_out and pre-broadcast
    # across the H_out sublanes (hoists all broadcasts out of the kernel).
    wdw = jnp.transpose(w_depthwise[:, 0, :, :], (1, 2, 0)).reshape(KH * KW, Cin)
    wdw_tiled = jnp.tile(wdw, (1, W_out)).astype(jnp.float32)        # (KH*KW, W_out*Cin)
    wdw_bcast = jnp.broadcast_to(
        wdw_tiled[:, None, :], (KH * KW, H_out, W_out * Cin)).astype(jnp.float32)

    # Pointwise weights as a block-diagonal (W_out*Cin, W_out*Cout) matrix so the
    # 1x1 conv is one lane-dense matmul with no in-kernel reshapes.
    wpw = jnp.transpose(w_pointwise[:, :, 0, 0], (1, 0)).astype(jnp.float32)  # (Cin, Cout)
    eye_w = jnp.eye(W_out, dtype=jnp.float32)
    b_mat = jnp.einsum("wv,co->wcvo", eye_w, wpw).reshape(W_out * Cin, W_out * Cout)

    kernel = functools.partial(_sepconv_kernel, H_out=H_out, KH=KH, KW=KW,
                               W_out=W_out, Cin=Cin)

    out_elem_bytes = jnp.dtype(x_nchw.dtype).itemsize
    bytes_accessed = (int(x_flat.size) * 4 + int(wdw_bcast.size) * 4
                      + int(b_mat.size) * 4
                      + N * H_out * W_out * Cout * out_elem_bytes)
    # Real work only (no block-diagonal FLOP inflation in the advisory estimate).
    flops = 2 * N * H_out * W_out * Cin * (KH * KW + Cout)

    out_flat = pl.pallas_call(
        kernel,
        out_shape=jax.ShapeDtypeStruct((N, H_out, W_out * Cout), x_nchw.dtype),
        grid_spec=pltpu.PrefetchScalarGridSpec(
            num_scalar_prefetch=0,
            grid=(N,),
            in_specs=[
                # One full padded image per grid step (DMA'd once per image).
                pl.BlockSpec((1, Hp, Wp * Cin), lambda n: (n, 0, 0)),
                pl.BlockSpec((KH * KW, H_out, W_out * Cin), lambda n: (0, 0, 0)),
                pl.BlockSpec((W_out * Cin, W_out * Cout), lambda n: (0, 0)),
            ],
            out_specs=pl.BlockSpec((1, H_out, W_out * Cout), lambda n: (n, 0, 0)),
        ),
        compiler_params=pltpu.CompilerParams(
            dimension_semantics=("parallel",)),   # v7x: one image per TensorCore
        cost_estimate=pl.CostEstimate(flops=flops, transcendentals=0,
                                      bytes_accessed=bytes_accessed),
    )(x_flat, wdw_bcast, b_mat)

    # (N, H, W*Cout) -> (N, H, W, Cout) -> (N, Cout, H, W)  (layout plumbing only)
    out_nhwc = out_flat.reshape(N, H_out, W_out, Cout)
    return jnp.transpose(out_nhwc, (0, 3, 1, 2))


def _reference(x_nchw, w_depthwise, w_pointwise, *, padding=1):
    """Pure-JAX reference (lax conv) mirroring torch semantics."""
    Cin = x_nchw.shape[1]
    dn = lax.conv_dimension_numbers(x_nchw.shape, w_depthwise.shape,
                                    ("NCHW", "OIHW", "NCHW"))
    y = lax.conv_general_dilated(
        x_nchw, w_depthwise, window_strides=(1, 1),
        padding=((padding, padding), (padding, padding)),
        dimension_numbers=dn, feature_group_count=Cin)
    dn2 = lax.conv_dimension_numbers(y.shape, w_pointwise.shape,
                                     ("NCHW", "OIHW", "NCHW"))
    return lax.conv_general_dilated(
        y, w_pointwise, window_strides=(1, 1), padding=((0, 0), (0, 0)),
        dimension_numbers=dn2)


if __name__ == "__main__":
    # Small deterministic config: N=2, Cin=4, Cout=8, H=W=16, k=3, pad=1.
    N, Cin, Cout, H, W, K, PAD = 2, 4, 8, 16, 16, 3, 1

    key = jax.random.PRNGKey(0)
    kx, kd, kp = jax.random.split(key, 3)
    x = jax.random.normal(kx, (N, Cin, H, W), dtype=jnp.float32)
    w_dw = jax.random.normal(kd, (Cin, 1, K, K), dtype=jnp.float32) * 0.1
    w_pw = jax.random.normal(kp, (Cout, Cin, 1, 1), dtype=jnp.float32) * 0.1

    out = separable_conv2d(x, w_dw, w_pw, padding=PAD)
    out = jax.block_until_ready(out)

    ref = _reference(x, w_dw, w_pw, padding=PAD)
    assert out.shape == (N, Cout, H, W), out.shape
    assert jnp.allclose(out, ref, atol=1e-4, rtol=1e-4), \
        float(jnp.max(jnp.abs(out - ref)))

    print("KERNEL_OK")
</pallas_src>

<mosaic_0001>
module attributes {stable_mosaic.version = 11 : i64} {
  func.func @_sepconv_kernel(%arg0: i32, %arg1: memref<1x18x72xf32, #tpu.memory_space<vmem>>, %arg2: memref<9x16x64xf32, #tpu.memory_space<vmem>>, %arg3: memref<64x128xf32, #tpu.memory_space<vmem>>, %arg4: memref<1x16x128xf32, #tpu.memory_space<vmem>>) attributes {dimension_semantics = [#tpu.dimension_semantics<parallel>], iteration_bounds = array<i64: 2>, scalar_prefetch = 0 : i64, scratch_operands = 0 : i64, tpu.core_type = #tpu.core_type<tc>, window_params = [{transform_indices = @transform_0, window_bounds = array<i64: 1, 18, 72>}, {pipeline_mode = #tpu.pipeline_mode<synchronous>, transform_indices = @transform_1, window_bounds = array<i64: 9, 16, 64>}, {pipeline_mode = #tpu.pipeline_mode<synchronous>, transform_indices = @transform_2, window_bounds = array<i64: 64, 128>}, {transform_indices = @transform_3, window_bounds = array<i64: 1, 16, 128>}]} {
    %c0 = arith.constant 0 : index
    %c0_0 = arith.constant 0 : index
    %c0_1 = arith.constant 0 : index
    %0 = vector.load %arg1[%c0, %c0_0, %c0_1] : memref<1x18x72xf32, #tpu.memory_space<vmem>>, vector<1x18x72xf32>
    %1 = vector.shape_cast %0 : vector<1x18x72xf32> to vector<18x72xf32>
    %cst = arith.constant 0.000000e+00 : f32
    %2 = vector.broadcast %cst : f32 to vector<16x64xf32>
    %3 = vector.extract_strided_slice %1 {offsets = [0, 0], sizes = [16, 64], strides = [1, 1]} : vector<18x72xf32> to vector<16x64xf32>
    %c0_2 = arith.constant 0 : index
    %c0_3 = arith.constant 0 : index
    %c0_4 = arith.constant 0 : index
    %4 = vector.load %arg2[%c0_2, %c0_3, %c0_4] : memref<9x16x64xf32, #tpu.memory_space<vmem>>, vector<1x16x64xf32>
    %5 = vector.shape_cast %4 : vector<1x16x64xf32> to vector<16x64xf32>
    %6 = arith.mulf %3, %5 : vector<16x64xf32>
    %7 = arith.addf %2, %6 : vector<16x64xf32>
    %8 = vector.extract_strided_slice %1 {offsets = [0, 4], sizes = [16, 64], strides = [1, 1]} : vector<18x72xf32> to vector<16x64xf32>
    %c1 = arith.constant 1 : index
    %c0_5 = arith.constant 0 : index
    %c0_6 = arith.constant 0 : index
    %9 = vector.load %arg2[%c1, %c0_5, %c0_6] : memref<9x16x64xf32, #tpu.memory_space<vmem>>, vector<1x16x64xf32>
    %10 = vector.shape_cast %9 : vector<1x16x64xf32> to vector<16x64xf32>
    %11 = arith.mulf %8, %10 : vector<16x64xf32>
    %12 = arith.addf %7, %11 : vector<16x64xf32>
    %13 = vector.extract_strided_slice %1 {offsets = [0, 8], sizes = [16, 64], strides = [1, 1]} : vector<18x72xf32> to vector<16x64xf32>
    %c2 = arith.constant 2 : index
    %c0_7 = arith.constant 0 : index
    %c0_8 = arith.constant 0 : index
    %14 = vector.load %arg2[%c2, %c0_7, %c0_8] : memref<9x16x64xf32, #tpu.memory_space<vmem>>, vector<1x16x64xf32>
    %15 = vector.shape_cast %14 : vector<1x16x64xf32> to vector<16x64xf32>
    %16 = arith.mulf %13, %15 : vector<16x64xf32>
    %17 = arith.addf %12, %16 : vector<16x64xf32>
    %18 = vector.extract_strided_slice %1 {offsets = [1, 0], sizes = [16, 64], strides = [1, 1]} : vector<18x72xf32> to vector<16x64xf32>
    %c3 = arith.constant 3 : index
    %c0_9 = arith.constant 0 : index
    %c0_10 = arith.constant 0 : index
    %19 = vector.load %arg2[%c3, %c0_9, %c0_10] : memref<9x16x64xf32, #tpu.memory_space<vmem>>, vector<1x16x64xf32>
    %20 = vector.shape_cast %19 : vector<1x16x64xf32> to vector<16x64xf32>
    %21 = arith.mulf %18, %20 : vector<16x64xf32>
    %22 = arith.addf %17, %21 : vector<16x64xf32>
    %23 = vector.extract_strided_slice %1 {offsets = [1, 4], sizes = [16, 64], strides = [1, 1]} : vector<18x72xf32> to vector<16x64xf32>
    %c4 = arith.constant 4 : index
    %c0_11 = arith.constant 0 : index
    %c0_12 = arith.constant 0 : index
    %24 = vector.load %arg2[%c4, %c0_11, %c0_12] : memref<9x16x64xf32, #tpu.memory_space<vmem>>, vector<1x16x64xf32>
    %25 = vector.shape_cast %24 : vector<1x16x64xf32> to vector<16x64xf32>
    %26 = arith.mulf %23, %25 : vector<16x64xf32>
    %27 = arith.addf %22, %26 : vector<16x64xf32>
    %28 = vector.extract_strided_slice %1 {offsets = [1, 8], sizes = [16, 64], strides = [1, 1]} : vector<18x72xf32> to vector<16x64xf32>
    %c5 = arith.constant 5 : index
    %c0_13 = arith.constant 0 : index
    %c0_14 = arith.constant 0 : index
    %29 = vector.load %arg2[%c5, %c0_13, %c0_14] : memref<9x16x64xf32, #tpu.memory_space<vmem>>, vector<1x16x64xf32>
    %30 = vector.shape_cast %29 : vector<1x16x64xf32> to vector<16x64xf32>
    %31 = arith.mulf %28, %30 : vector<16x64xf32>
    %32 = arith.addf %27, %31 : vector<16x64xf32>
    %33 = vector.extract_strided_slice %1 {offsets = [2, 0], sizes = [16, 64], strides = [1, 1]} : vector<18x72xf32> to vector<16x64xf32>
    %c6 = arith.constant 6 : index
    %c0_15 = arith.constant 0 : index
    %c0_16 = arith.constant 0 : index
    %34 = vector.load %arg2[%c6, %c0_15, %c0_16] : memref<9x16x64xf32, #tpu.memory_space<vmem>>, vector<1x16x64xf32>
    %35 = vector.shape_cast %34 : vector<1x16x64xf32> to vector<16x64xf32>
    %36 = arith.mulf %33, %35 : vector<16x64xf32>
    %37 = arith.addf %32, %36 : vector<16x64xf32>
    %38 = vector.extract_strided_slice %1 {offsets = [2, 4], sizes = [16, 64], strides = [1, 1]} : vector<18x72xf32> to vector<16x64xf32>
    %c7 = arith.constant 7 : index
    %c0_17 = arith.constant 0 : index
    %c0_18 = arith.constant 0 : index
    %39 = vector.load %arg2[%c7, %c0_17, %c0_18] : memref<9x16x64xf32, #tpu.memory_space<vmem>>, vector<1x16x64xf32>
    %40 = vector.shape_cast %39 : vector<1x16x64xf32> to vector<16x64xf32>
    %41 = arith.mulf %38, %40 : vector<16x64xf32>
    %42 = arith.addf %37, %41 : vector<16x64xf32>
    %43 = vector.extract_strided_slice %1 {offsets = [2, 8], sizes = [16, 64], strides = [1, 1]} : vector<18x72xf32> to vector<16x64xf32>
    %c8 = arith.constant 8 : index
    %c0_19 = arith.constant 0 : index
    %c0_20 = arith.constant 0 : index
    %44 = vector.load %arg2[%c8, %c0_19, %c0_20] : memref<9x16x64xf32, #tpu.memory_space<vmem>>, vector<1x16x64xf32>
    %45 = vector.shape_cast %44 : vector<1x16x64xf32> to vector<16x64xf32>
    %46 = arith.mulf %43, %45 : vector<16x64xf32>
    %47 = arith.addf %42, %46 : vector<16x64xf32>
    %c0_21 = arith.constant 0 : index
    %c0_22 = arith.constant 0 : index
    %48 = vector.load %arg3[%c0_21, %c0_22] : memref<64x128xf32, #tpu.memory_space<vmem>>, vector<64x128xf32>
    %cst_23 = arith.constant dense<0.000000e+00> : vector<16x128xf32>
    %49 = tpu.matmul %47, %48, %cst_23 {dimension_numbers = #tpu.dot_dimension_numbers<[1], [0], [0], [1], [0, 0, 1, 1], [], []>} : vector<16x64xf32>, vector<64x128xf32>, vector<16x128xf32> -> vector<16x128xf32>
    %c0_24 = arith.constant 0 : index
    %c0_25 = arith.constant 0 : index
    %c0_26 = arith.constant 0 : index
    %50 = vector.load %arg4[%c0_24, %c0_25, %c0_26] : memref<1x16x128xf32, #tpu.memory_space<vmem>>, vector<1x16x128xf32>
    %51 = vector.shape_cast %50 : vector<1x16x128xf32> to vector<16x128xf32>
    %52 = vector.shape_cast %49 : vector<16x128xf32> to vector<1x16x128xf32>
    tpu.vector_store %arg4[%c0_24, %c0_25, %c0_26], %52 {strides = array<i32>} : memref<1x16x128xf32, #tpu.memory_space<vmem>>, vector<1x16x128xf32>,
    return
  }
  func.func @transform_0(%arg0: i32) -> (i32, i32, i32) {
    %c0_i32 = arith.constant 0 : i32
    %c0_i32_0 = arith.constant 0 : i32
    %c0_i32_1 = arith.constant 0 : i32
    return %arg0, %c0_i32, %c0_i32_0 : i32, i32, i32
  }
  func.func @transform_1(%arg0: i32) -> (i32, i32, i32) {
    %c0_i32 = arith.constant 0 : i32
    %c0_i32_0 = arith.constant 0 : i32
    %c0_i32_1 = arith.constant 0 : i32
    %c0_i32_2 = arith.constant 0 : i32
    return %c0_i32, %c0_i32_0, %c0_i32_1 : i32, i32, i32
  }
  func.func @transform_2(%arg0: i32) -> (i32, i32) {
    %c0_i32 = arith.constant 0 : i32
    %c0_i32_0 = arith.constant 0 : i32
    %c0_i32_1 = arith.constant 0 : i32
    return %c0_i32, %c0_i32_0 : i32, i32
  }
  func.func @transform_3(%arg0: i32) -> (i32, i32, i32) {
    %c0_i32 = arith.constant 0 : i32
    %c0_i32_0 = arith.constant 0 : i32
    %c0_i32_1 = arith.constant 0 : i32
    return %arg0, %c0_i32, %c0_i32_0 : i32, i32, i32
  }
}

</mosaic_0001>

<bundles_post_ra>
// kernel: tpu_custom_call.1
= control target key start
LH: loop header
LB: loop body
LE: loop exit
PB: predicated region body
PF: predicated region fallthrough
CT: control target
= control target key end

     0   :  { %8 = vsyncpa [#allocation3], 0  ;;  %s1114_s0 = inlined_call_operand.vmem [shape: f32[2,18,72], index: 0, kind: input, shape index: {}]   ;;  %s1115_s1 = inlined_call_operand.hbm [shape: f32[9,16,64], index: 1, kind: input, shape index: {}]   ;;  %s1116_s2 = inlined_call_operand.vmem [shape: f32[64,128], index: 2, kind: input, shape index: {}]   ;;  %s1117_s3 = inlined_call_operand.hbm [shape: f32[2,16,128], index: 3, kind: output, shape index: {}]  }
   0x1   :  { %9 = vsyncpa [#allocation4], 0 }
   0x2   :  { %11 = vsyncpa [#allocation4 + $0x1], 0  ;;  %s863_s12 = smov 0   ;;  %s865_s13 = smov 0  }
   0x3   :  { %s867_s14 = smov 0   ;;  %s869_s15 = smov 0  }
   0x4 LB: > { %s884_s16 = sadd.s32 4294967295, %s832_s15   ;;  %s619_s17 = sadd.s32 4294967294, %s832_s15   ;;  %s832_s15 = sphi %s869_s15, %s1133_s15   ;;  %s828_s14 = sphi %s867_s14, %s1132_s14   ;;  %s824_s13 = sphi %s865_s13, %s1131_s13   ;;  %s820_s12 = sphi %s863_s12, %s1130_s12  }
   0x5   : > { %s888_s18 = sadd.s32 1, %s832_s15   ;;  %s92_s19 = sadd.s32 1, %s828_s14 }
   0x6   : > { %s89_s20 = ssub.s32 %s832_s15, %s888_s18  ;;  %p102_p0 = scmp.ne.s32.totalorder %s828_s14, %s824_s13 }
   0x7   : > { %p90_p1 = scmp.eq.s32.totalorder %s89_s20, 0  ;;  %p103_p2 = scmp.eq.s32.totalorder %s884_s16, 1 }
   0x8   : > { %p108_p3 = scmp.ne.s32.totalorder %s824_s13, %s820_s12  ;;  %p109_p4 = scmp.eq.s32.totalorder %s619_s17, 1 }
   0x9   : > { %s899_s21 = scalar_select %p90_p1, %s828_s14, %s92_s19  }
   0xa   : > { %p901_p5 = por %p103_p2, %p102_p0  ;;  %p905_p6 = por %p109_p4, %p108_p3 }
   0xb   : > { %p620_p7 = scmp.ge.s32.totalorder %s832_s15, 1  ;;  %p116_p8 = scmp.lt.s32.totalorder %s832_s15, 3 }
   0xc   : > { %s1121_s22 = scalar_select %p901_p5, 1, 0 }
   0xd   : > { %s1122_s23 = scalar_select %p905_p6, 1, 0 }
   0xe   : > { %p1118_p9 = scmp.eq.s32.totalorder %s884_s16, 0  ;;  %p912_p10 = pnand %p620_p7, %p116_p8 }
   0xf   : > { %s834_s25 = smov [#allocation2]   ;;  %s738_s30 = scalar_lea.hbm %s1115_s1, 2304 }
  0x10   : > { %s1123_s24 = scalar_select %p912_p10, 1, 0 }
  0x11   : > { %s128_s26 = sshll.u32 %s834_s25, 4  ;;  %p687_p11 = pneg %p912_p10  ;;  %s129_s26 = int_to_ptr.vmem [resolvable:$true] %s128_s26 }
  0x12   : > { %p739_p13 = scmp.ne.s32.totalorder %s1115_s1, %s738_s30  ;;  %p745_p3 = scmp.lt.u32.totalorder %s738_s30, %s1115_s1 }
  0x13   : > { %p920_p12 = pnand %p1118_p9, %p687_p11 }
  0x15   : > { %p740_p0 = pneg %p920_p12 }
  0x17   : > { %p741_p1 = pnand %p740_p0, %p739_p13 }
  0x19   : > { %p742_p2 = pneg %p741_p1 }
  0x1b   : > { %p747_p4 = pnand %p745_p3, %p742_p2 }
  0x1d   : > { %750 = shalt.err (!%p747_p4)
}
  0x1e   : > { %s751_s8 = scalar_lea.vmem %s129_s26, 2304  ;;  %p759_p9 = scmp.lt.s32.totalorder %s129_s26, %s129_s26 }
  0x1f   : > { %p752_p7 = scmp.ne.s32.totalorder %s129_s26, %s751_s8  ;;  %p760_p6 = scmp.lt.s32.totalorder %s751_s8, %s751_s8 }
  0x21   : > { %p754_p8 = pnand %p752_p7, %p740_p0  ;;  %p761_p5 = por %p760_p6, %p759_p9 }
  0x23   : > { %p755_p11 = pneg %p754_p8 }
  0x25   : > { %p762_p10 = pnand %p761_p5, %p755_p11 }
  0x27   : > { %765 = shalt.err (!%p762_p10)
}
  0x28   : > { %s835_s9 = smov 128   ;;  %s836_s10 = smov 8  }
  0x29   : > { %690 = dma.hbm_to_vmem [thread:$0]  (!%p920_p12), %s1115_s1, 2304, %s129_s26, [#allocation3], %s835_s9, %s835_s9, %s836_s10  }
  0x2a   : > { %p1125_p13 = scmp.ne.s32.totalorder %s1123_s24, 0 }
  0x2b   : > { %p1126_p1 = scmp.eq.s32.totalorder (!%p1125_p13), %s884_s16, 0 }
  0x2c   : > { %155 = sbr.rel (%p1125_p13) target bundleno = 547 (0x223), region = 32 }
  0x33   : > { %811 = dma.done.wait (%p1126_p1), [#allocation3], 2304   ;;  %p1127_p0 = pmov %p1126_p1 }
  0x34   : > { %v217_v0 = vld [vmem:[#allocation2 + $0x20] sm:$0xff]  ;;  %v194_v1 = vld [vmem:[#allocation2 + $0x10] sm:$0xff]  ;;  %s837_s19 = smov 8   ;;  %s838_s20 = smov 4   ;;  %v218_v2 = vld [vmem:[#allocation2 + $0x28] sm:$0xff]  ;;  %vm244_vm0 = vcmask 1040384  }
  0x35   : > { %813 = vsyncadd (%p1127_p0), [#allocation3], 4294964992  ;;  %221 = vrot.lane.b32.xlu1 %v217_v0, %s837_s19  ;;  %198 = vrot.lane.b32.xlu0 %v194_v1, %s838_s20  ;;  %v195_v3 = vld [vmem:[#allocation2 + $0x18] sm:$0xff]  ;;  %v268_v4 = vld [vmem:[#allocation2 + $0x40] sm:$0xff]  ;;  %vm344_vm1 = vcmask 1041408   ;;  %p179_p5 = scmp.lt.s32.totalorder %s884_s16, 1 }
  0x36   : > { %v269_v5 = vld [vmem:[#allocation2 + $0x48] sm:$0xff]  ;;  %v272_v6 = vrot.slane %v268_v4, 7  ;;  %v304_v9 = vld [vmem:[#allocation2 + $0x50] sm:$0xff]  ;;  %v305_v10 = vld [vmem:[#allocation2 + $0x58] sm:$0xff]  ;;  %vm257_vm2 = vcmask 1046528   ;;  %s839_s29 = smov 124  }
  0x37   : > { %v273_v7 = vrot.slane %v269_v5, 7  ;;  %v308_v11 = vrot.slane %v304_v9, 7  ;;  %v309_v12 = vrot.slane %v305_v10, 7  ;;  %v368_v13 = vld [vmem:[#allocation2 + $0x70] sm:$0xff]  ;;  %v369_v14 = vld [vmem:[#allocation2 + $0x78] sm:$0xff]  ;;  %v404_v19 = vld [vmem:[#allocation2 + $0x80] sm:$0xff] }
  0x38   : > { %v372_v16 = vrot.slane %v368_v13, 6  ;;  %v373_v17 = vrot.slane %v369_v14, 6  ;;  %v405_v20 = vld [vmem:[#allocation2 + $0x88] sm:$0xff]  ;;  %v408_v21 = vrot.slane %v404_v19, 6  ;;  %s180_s24 = scalar_select %p179_p5, %s884_s16, 1  ;;  %v240_v24 = vld [vmem:[#allocation2 + $0x30] sm:$0xff] }
  0x39   : > { %223 = vrot.lane.b32.xlu1 %v218_v2, %s837_s19  ;;  %200 = vrot.lane.b32.xlu0 %v195_v3, %s838_s20  ;;  %v274_v8 = vsel %vm244_vm0, %v272_v6, %v273_v7  ;;  %v310_v15 = vsel %vm244_vm0, %v308_v11, %v309_v12  ;;  %v409_v22 = vrot.slane %v405_v20, 6  ;;  %v241_v25 = vld [vmem:[#allocation2 + $0x38] sm:$0xff]  ;;  %v245_v26 = vrot.slane %v240_v24, 7  ;;  %v340_v34 = vld [vmem:[#allocation2 + $0x60] sm:$0xff]  ;;  %v341_v35 = vld [vmem:[#allocation2 + $0x68] sm:$0xff]  ;;  %s840_s7 = smov 120  }
  0x3a   : > { %v374_v18 = vsel %vm344_vm1, %v372_v16, %v373_v17  ;;  %v246_v27 = vrot.slane %v241_v25, 7  ;;  %s680_s25 = smul.u32 24, %s180_s24  ;;  %v345_v38 = vrot.slane %v340_v34, 6  ;;  %v346_v39 = vrot.slane %v341_v35, 6  ;;  %v439_v53 = vld [vmem:[%s1116_s2] sm:$0xff]  ;;  %v440_v54 = vld [vmem:[%s1116_s2 + $0x8] sm:$0xff] }
  0x3b   : > { %v410_v23 = vsel %vm344_vm1, %v408_v21, %v409_v22  ;;  %v664_v56 = vpack.c.bf16 %v440_v54, %v439_v53  ;;  %vm357_vm3 = vcmask 1045504   ;;  %v441_v2 = vld [vmem:[%s1116_s2 + $0x10] sm:$0xff]  ;;  %v442_v3 = vld [vmem:[%s1116_s2 + $0x18] sm:$0xff]  ;;  %v443_v13 = vld [vmem:[%s1116_s2 + $0x20] sm:$0xff]  ;;  %vm447_vm4 = vcmask 523264   ;;  %p1128_p9 = scmp.ne.s32.totalorder %s1121_s22, 0 }
  0x3c   : > { %v247_v28 = vsel %vm244_vm0, %v245_v26, %v246_v27  ;;  %s183_s28 = scalar_lea.vmem %s1114_s0, %s680_s25  ;;  %v347_v43 = vsel %vm344_vm1, %v345_v38, %v346_v39  ;;  %v668_v4 = vpack.c.bf16 %v442_v3, %v441_v2  ;;  %v444_v14 = vld [vmem:[%s1116_s2 + $0x28] sm:$0xff]  ;;  %v446_v24 = vld [vmem:[%s1116_s2 + $0x38] sm:$0xff] }
  0x3d   : > { %277 = vrot.lane.b32.xlu1 %v274_v8, %s838_s20  ;;  %275 = vrot.lane.b32.xlu0 %v272_v6, %s838_s20  ;;  %v972_v29 = vld [vmem:[%s183_s28 + $0x8] sm:$0xff]  ;;  %v975_v31 = vld [vmem:[%s183_s28] sm:$0xff] }
  0x3e   : > { %v252_v30 = vmul.f32 %v247_v28, %v972_v29  ;;  %v251_v33 = vmul.f32 %v245_v26, %v975_v31  ;;  %v978_v37 = vld [vmem:[%s183_s28 + $0x10] sm:$0x3]  ;;  %v352_v48 = vmul.f32 %v347_v43, %v972_v29  ;;  %v351_v57 = vmul.f32 %v345_v38, %v975_v31  ;;  %665 = vmatprep.subr.bf16.mxu0 %v664_v56 }
  0x3f   : > { %v253_v41 = vmul.f32 %v246_v27, %v978_v37  ;;  %v353_v58 = vmul.f32 %v346_v39, %v978_v37  ;;  %667 = vmatpush3.bf16.msra.mxu0 %v664_v56 }
  0x40   : > { %v259_v32 = vrot.slane %v252_v30, 1  ;;  %v258_v36 = vrot.slane %v251_v33, 1  ;;  %v359_v55 = vrot.slane %v352_v48, 2  ;;  %v358_v61 = vrot.slane %v351_v57, 2  ;;  %669 = vmatprep.subr.bf16.mxu0 %v668_v4 }
  0x41   : > { %311 = vrot.lane.b32.xlu1 %v308_v11, %s837_s19  ;;  %279 = vrot.lane.b32.xlu0 %v273_v7, %s838_s20  ;;  %v261_v42 = vrot.slane %v253_v41, 1  ;;  %v361_v62 = vrot.slane %v353_v58, 2  ;;  %v187_v58 = vld [vmem:[#allocation2] sm:$0xff] }
  0x42   : > { %v981_v40 = vsel %vm257_vm2, %v258_v36, %v259_v32  ;;  %v1013_v5 = vsel %vm357_vm3, %v358_v61, %v359_v55  ;;  %v188_v61 = vld [vmem:[#allocation2 + $0x8] sm:$0xff] }
  0x43   : > { %v986_v44 = vsel %vm257_vm2, %v259_v32, %v261_v42  ;;  %v1016_v6 = vsel %vm357_vm3, %v359_v55, %v361_v62  ;;  %671 = vmatpush3.bf16.msra.mxu0 %v668_v4 }
  0x45   : > { %315 = vrot.lane.b32.xlu1 %v309_v12, %s837_s19  ;;  %313 = vrot.lane.b32.xlu0 %v310_v15, %s837_s19  ;;  %v672_v15 = vpack.c.bf16 %v444_v14, %v443_v13 }
  0x47   : > { %673 = vmatprep.subr.bf16.mxu0 %v672_v15 }
  0x48   : > { %675 = vmatpush3.bf16.msra.mxu0 %v672_v15 }
  0x49   : > { %377 = vrot.lane.b32.xlu1 %v374_v18, %s838_s20  ;;  %375 = vrot.lane.b32.xlu0 %v372_v16, %s838_s20 }
  0x4d   : > { %411 = vrot.lane.b32.xlu1 %v408_v21, %s837_s19  ;;  %379 = vrot.lane.b32.xlu0 %v373_v17, %s838_s20 }
  0x51   : > { %415 = vrot.lane.b32.xlu1 %v409_v22, %s837_s19  ;;  %413 = vrot.lane.b32.xlu0 %v410_v23, %s837_s19  ;;  %v445_v23 = vld [vmem:[%s1116_s2 + $0x30] sm:$0xff] }
  0x52   : > { %v676_v25 = vpack.c.bf16 %v446_v24, %v445_v23 }
  0x54   : > { %677 = vmatprep.subr.bf16.mxu0 %v676_v25 }
  0x55   : > { %679 = vmatpush3.bf16.msra.mxu0 %v676_v25 }
  0xa7   : > { %v222_v45 = vpop.permute.xlu1 %221  ;;  %v199_v46 = vpop.permute.xlu0 %198 }
  0xa8   : > { %v204_v47 = vmul.f32 %v199_v46, %v975_v31  ;;  %v227_v51 = vmul.f32 %v222_v45, %v975_v31 }
  0xaa   : > { %208 = vrot.lane.b32.xlu0 %v204_v47, %s839_s29 }
  0xab   : > { %v224_v49 = vpop.permute.xlu1 %223  ;;  %v201_v50 = vpop.permute.xlu0 %200 }
  0xac   : > { %v205_v52 = vmul.f32 %v201_v50, %v972_v29  ;;  %v228_v63 = vmul.f32 %v224_v49, %v972_v29 }
  0xae   : > { %210 = vrot.lane.b32.xlu1 %v205_v52, %s839_s29  ;;  %231 = vrot.lane.b32.xlu0 %v227_v51, %s840_s7 }
  0xaf   : > { %v278_v59 = vpop.permute.xlu1 %277  ;;  %v276_v60 = vpop.permute.xlu0 %275 }
  0xb0   : > { %v285_v0 = vmul.f32 %v278_v59, %v972_v29  ;;  %v284_v1 = vmul.f32 %v276_v60, %v975_v31 }
  0xb2   : > { %v291_v7 = vrot.slane %v285_v0, 1  ;;  %v290_v8 = vrot.slane %v284_v1, 1  ;;  %233 = vrot.lane.b32.xlu1 %v228_v63, %s840_s7  ;;  %v190_v1 = vmul.f32 %v188_v61, %v972_v29 }
  0xb3   : > { %v312_v9 = vpop.permute.xlu1 %311  ;;  %v280_v10 = vpop.permute.xlu0 %279 }
  0xb4   : > { %v286_v11 = vmul.f32 %v280_v10, %v978_v37  ;;  %v292_v12 = vsel %vm257_vm2, %v290_v8, %v291_v7  ;;  %v320_v16 = vmul.f32 %v312_v9, %v975_v31 }
  0xb5   : > { %295 = vrot.lane.b32.xlu0 %v292_v12, %s839_s29 }
  0xb6   : > { %v293_v17 = vrot.slane %v286_v11, 1  ;;  %v326_v26 = vrot.slane %v320_v16, 1 }
  0xb7   : > { %v316_v18 = vpop.permute.xlu1 %315  ;;  %v314_v19 = vpop.permute.xlu0 %313 }
  0xb8   : > { %v322_v20 = vmul.f32 %v316_v18, %v978_v37  ;;  %v321_v21 = vmul.f32 %v314_v19, %v972_v29  ;;  %v294_v22 = vsel %vm257_vm2, %v291_v7, %v293_v17 }
  0xb9   : > { %297 = vrot.lane.b32.xlu1 %v294_v22, %s839_s29 }
  0xba   : > { %v329_v27 = vrot.slane %v322_v20, 1  ;;  %v327_v28 = vrot.slane %v321_v21, 1 }
  0xbb   : > { %v378_v30 = vpop.permute.xlu1 %377  ;;  %v376_v32 = vpop.permute.xlu0 %375 }
  0xbc   : > { %v385_v33 = vmul.f32 %v378_v30, %v972_v29  ;;  %v384_v34 = vmul.f32 %v376_v32, %v975_v31  ;;  %v330_v35 = vsel %vm257_vm2, %v327_v28, %v329_v27  ;;  %v328_v36 = vsel %vm257_vm2, %v326_v26, %v327_v28 }
  0xbd   : > { %333 = vrot.lane.b32.xlu1 %v330_v35, %s840_s7  ;;  %331 = vrot.lane.b32.xlu0 %v328_v36, %s840_s7 }
  0xbe   : > { %v391_v38 = vrot.slane %v385_v33, 2  ;;  %v390_v39 = vrot.slane %v384_v34, 2 }
  0xbf   : > { %v412_v41 = vpop.permute.xlu1 %411  ;;  %v380_v42 = vpop.permute.xlu0 %379 }
  0xc0   : > { %v386_v43 = vmul.f32 %v380_v42, %v978_v37  ;;  %v392_v45 = vsel %vm357_vm3, %v390_v39, %v391_v38  ;;  %v420_v46 = vmul.f32 %v412_v41, %v975_v31 }
  0xc1   : > { %395 = vrot.lane.b32.xlu0 %v392_v45, %s839_s29 }
  0xc2   : > { %v393_v47 = vrot.slane %v386_v43, 2  ;;  %v426_v53 = vrot.slane %v420_v46, 2 }
  0xc3   : > { %v416_v48 = vpop.permute.xlu1 %415  ;;  %v414_v49 = vpop.permute.xlu0 %413 }
  0xc4   : > { %v422_v50 = vmul.f32 %v416_v48, %v978_v37  ;;  %v421_v51 = vmul.f32 %v414_v49, %v972_v29  ;;  %v394_v52 = vsel %vm357_vm3, %v391_v38, %v393_v47  ;;  %v189_v37 = vmul.f32 %v187_v58, %v975_v31 }
  0xc5   : > { %397 = vrot.lane.b32.xlu1 %v394_v52, %s839_s29  ;;  %s176_s29 = sand.u32 1, %s824_s13  }
  0xc6   : > { %v429_v54 = vrot.slane %v422_v50, 2  ;;  %v427_v55 = vrot.slane %v421_v51, 2  ;;  %s625_s4 = sshll.u32 %s176_s29, 4  ;;  %s1072_s11 = scalar_lea.sflag [#allocation4], %s176_s29 }
  0xc7   : > { %s178_s5 = scalar_lea.vmem [#allocation5], %s625_s4 }
  0xc8   : > { %v430_v56 = vsel %vm357_vm3, %v427_v55, %v429_v54  ;;  %v428_v57 = vsel %vm357_vm3, %v426_v53, %v427_v55  ;;  %s545_s6 = sshll.u32 %s178_s5, 4  ;;  %s1065_s6 = int_to_ptr.vmem [resolvable:$true] %s545_s6 }
  0xc9   : > { %433 = vrot.lane.b32.xlu1 %v430_v56, %s840_s7  ;;  %431 = vrot.lane.b32.xlu0 %v428_v57, %s840_s7  ;;  %s634_s7 = sshll.u32 %s884_s16, 8  ;;  %s766_s17 = scalar_lea.vmem %s1065_s6, 256 }
  0xca   : > { %s1070_s10 = scalar_lea.hbm %s1117_s3, %s634_s7  ;;  %p767_p6 = scmp.ne.s32.totalorder %s1065_s6, %s766_s17 }
  0xcb   : > { %s841_s16 = smov [#allocation5]  }
  0xcc   : > { %p768_p10 = pnand %p767_p6, %p1128_p9  ;;  %s770_s20 = sshll.u32 %s841_s16, 4  ;;  %s771_s20 = int_to_ptr.vmem [resolvable:$false] %s770_s20 }
  0xcd   : > { %s772_s24 = scalar_lea.vmem %s771_s20, 512  ;;  %p773_p2 = scmp.lt.s32.totalorder %s1065_s6, %s771_s20 }
  0xce   : > { %p769_p12 = pneg %p768_p10  ;;  %p774_p3 = scmp.lt.s32.totalorder %s772_s24, %s766_s17 }
  0xd0   : > { %p775_p4 = por %p774_p3, %p773_p2 }
  0xd2   : > { %p776_p7 = pnand %p775_p4, %p769_p12 }
 0x11c   : > { %v209_v59 = vpop.permute.xlu0 %208 }
 0x11d   : > { %v214_v60 = vadd.f32 %v209_v59, %v189_v37 }
 0x120   : > { %v211_v62 = vpop.permute.xlu1 %210  ;;  %v232_v63 = vpop.permute.xlu0 %231 }
 0x121   : > { %v237_v0 = vadd.f32 %v232_v63, %v214_v60  ;;  %v215_v4 = vadd.f32 %v211_v62, %v190_v1 }
 0x123   : > { %v265_v2 = vadd.f32 %v981_v40, %v237_v0 }
 0x124   : > { %v234_v3 = vpop.permute.xlu1 %233 }
 0x125   : > { %v238_v7 = vadd.f32 %v234_v3, %v215_v4 }
 0x127   : > { %v296_v8 = vpop.permute.xlu0 %295  ;;  %v266_v10 = vadd.f32 %v986_v44, %v238_v7 }
 0x128   : > { %v301_v11 = vadd.f32 %v296_v8, %v265_v2 }
 0x12b   : > { %v298_v9 = vpop.permute.xlu1 %297 }
 0x12c   : > { %v302_v12 = vadd.f32 %v298_v9, %v266_v10 }
 0x12f   : > { %v334_v31 = vpop.permute.xlu1 %333  ;;  %v332_v13 = vpop.permute.xlu0 %331 }
 0x130   : > { %v338_v14 = vadd.f32 %v334_v31, %v302_v12  ;;  %v337_v15 = vadd.f32 %v332_v13, %v301_v11 }
 0x132   : > { %v365_v16 = vadd.f32 %v1013_v5, %v337_v15  ;;  %v366_v29 = vadd.f32 %v1016_v6, %v338_v14 }
 0x133   : > { %v396_v40 = vpop.permute.xlu0 %395 }
 0x134   : > { %v401_v18 = vadd.f32 %v396_v40, %v365_v16 }
 0x137   : > { %v398_v17 = vpop.permute.xlu1 %397 }
 0x138   : > { %v402_v19 = vadd.f32 %v398_v17, %v366_v29 }
 0x13b   : > { %v434_v20 = vpop.permute.xlu1 %433  ;;  %v432_v21 = vpop.permute.xlu0 %431 }
 0x13c   : > { %v438_v44 = vadd.f32 %v434_v20, %v402_v19  ;;  %v437_v22 = vadd.f32 %v432_v21, %v401_v18 }
 0x13e   : > { %661 = vmatprep.mubr.msk.f32.mxu0 %vm447_vm4, %v437_v22 }
 0x13f   : > { %662 = vmatmul.mubr.msk.f32.vlgmr.msra.gmra.mrb[0].mxu0 %vm447_vm4, %v438_v44 }
 0x212   : > { %v663_v5 = vpop.f32.mrb[0].mxu0 }
 0x213   : > { %530 = vst [vmem:[%s178_s5 + $0x8] sm:$0xff] %v663_v5  ;;  %v520_v6 = vpop.f32.mrb[1].mxu0 }
 0x214   : > { %529 = vst [vmem:[%s178_s5] sm:$0xff] %v520_v6 }
 0x215   : > { %779 = shalt.err (!%p776_p7)
}
 0x216   : > { %s780_s25 = scalar_lea.hbm %s1070_s10, 256  ;;  %s784_s28 = scalar_lea.hbm %s1117_s3, 512 }
 0x217   : > { %p781_p8 = scmp.ne.s32.totalorder %s1070_s10, %s780_s25  ;;  %p785_p1 = scmp.lt.u32.totalorder %s1070_s10, %s1117_s3 }
 0x218   : > { %p786_p0 = scmp.lt.u32.totalorder %s784_s28, %s780_s25  ;;  %p788_p6 = scmp.lt.u32.totalorder %s780_s25, %s1070_s10 }
 0x219   : > { %p782_p11 = pnand %p781_p8, %p1128_p9 }
 0x21a   : > { %p787_p5 = por %p786_p0, %p785_p1 }
 0x21b   : > { %p783_p13 = pneg %p782_p11 }
 0x21c   : > { %p789_p10 = por %p788_p6, %p787_p5 }
 0x21e   : > { %p790_p12 = pnand %p789_p10, %p783_p13 }
 0x220   : > { %793 = shalt.err (!%p790_p12)
}
 0x221   : > { %s842_s4 = smov 128  }
 0x222   : > { %685 = dma.vmem_to_hbm [thread:$0]  (%p1128_p9), %s1065_s6, 256, %s1070_s10, %s1072_s11, %s842_s4, %s842_s4, %s837_s19  }
 0x223 PF: > { %p697_p2 = scmp.ge.s32.totalorder %s832_s15, 2  ;;  %s560_s5 = sand.u32 1, %s820_s12  }
 0x224   : > { %p1129_p3 = scmp.ne.s32.totalorder %s1122_s23, 0  ;;  %s561_s7 = scalar_lea.sflag [#allocation4], %s560_s5 }
 0x226   : > { %p692_p4 = pnand %p697_p2, %p1129_p3 }
 0x228   : > { %815 = dma.done.wait (!%p692_p4), %s561_s7, 256  }
 0x229   : > { %817 = vsyncadd (!%p692_p4), %s561_s7, 4294967040  ;;  %p14_p7 = scmp.ge.s32.totalorder %s888_s18, 4   ;;  %s1130_s12 = smov %s824_s13 }
 0x22a   : > { %s1131_s13 = smov %s828_s14  ;;  %s1132_s14 = smov %s899_s21 }
 0x22b   : > { %s1133_s15 = smov %s888_s18  ;;  %16 = sbr.rel (!%p14_p7) target bundleno = 4 (0x4), region = 80 }
 0x232   :  { %566 = vsyncpa [#allocation3], 1 }
 0x233   :  { %568 = vsyncpa [#allocation3 + $0x1], 1 }
 0x234   :  { %569 = vsyncpa [#allocation4], 1 }
 0x235   :  { %571 = vsyncpa [#allocation4 + $0x1], 1 }

</bundles_post_ra>
